<compile_context>
chip_gen: v5e
topology: v5e:2x2
jax: 0.10.0
libtpu: 0.0.40
codegen_flags: <defaults>
</compile_context>

<pallas_src>
import jax
import jax.numpy as jnp
from jax.experimental import pallas as pl
from jax.experimental.pallas import tpu as pltpu


def _logreg_kernel(w_ref, b_ref, x_ref, o_ref):
    # w_ref, b_ref: (1, 1) scalars in SMEM; x_ref / o_ref: (tile_rows, lanes) VMEM tiles.
    w = w_ref[0, 0]
    b = b_ref[0, 0]
    z = x_ref[...] * w + b                       # x @ W.T + b with in/out features = 1
    # sigmoid = 1 / (1 + exp(-z)): exp and approx reciprocal both route to the EUP
    # slot, keeping VALU slots free (kernel is HBM-bound anyway, but this is free).
    o_ref[...] = pl.reciprocal(1.0 + jnp.exp(-z), approx=True)


def _round_up(a, b):
    return ((a + b - 1) // b) * b


def logistic_regression_forward(x, weight, bias):
    """x: (N, 1); weight: (1, 1); bias: (1,) -> sigmoid(x @ W.T + b) of shape (N, 1)."""
    n = x.shape[0]
    # Avoid an extra un-fused HBM pass: only cast if needed.
    xf = x if x.dtype == jnp.float32 else x.astype(jnp.float32)
    flat = xf.reshape(-1)                        # feature dim is 1 -> pure elementwise

    # Lane-dense slab: last dim a multiple of 128. Use the full 1024-wide tiles for
    # big inputs, the minimal 128 for tiny ones (keeps padding negligible).
    lanes = 1024 if flat.size >= 1024 else 128
    rows = pl.cdiv(flat.size, lanes)
    # Rows per grid step: multiple of 8 (sublanes), capped so a tile is <= 2 MiB f32
    # (512 x 1024 x 4 B).  2 arrays x 2 pipeline buffers x 2 MiB = 8 MiB resident,
    # comfortably inside v7x's 64 MiB physical / 32 MiB default-scoped VMEM.
    tile_rows = min(512, _round_up(rows, 8))
    rows_padded = _round_up(rows, tile_rows)

    pad_amount = rows_padded * lanes - flat.size
    slab = jnp.pad(flat, (0, pad_amount)).reshape(rows_padded, lanes)

    w2 = weight.reshape(1, 1).astype(jnp.float32)
    b2 = bias.reshape(1, 1).astype(jnp.float32)

    out_slab = pl.pallas_call(
        _logreg_kernel,
        out_shape=jax.ShapeDtypeStruct((rows_padded, lanes), jnp.float32),
        grid=(rows_padded // tile_rows,),
        in_specs=[
            pl.BlockSpec(memory_space=pltpu.SMEM),               # weight scalar
            pl.BlockSpec(memory_space=pltpu.SMEM),               # bias scalar
            pl.BlockSpec((tile_rows, lanes), lambda i: (i, 0)),  # lane-dense input tile
        ],
        out_specs=pl.BlockSpec((tile_rows, lanes), lambda i: (i, 0)),
        compiler_params=pltpu.CompilerParams(
            dimension_semantics=("parallel",),   # shard tiles across both TCs on v7x
        ),
    )(w2, b2, slab)

    # Drop the zero padding and restore the (N, 1) module output shape.
    return out_slab.reshape(-1)[:n].reshape(n, 1)


if __name__ == "__main__":
    key = jax.random.PRNGKey(0)
    kx, kw, kb = jax.random.split(key, 3)

    # nn.Linear(1, 1) parameters: weight (1, 1), bias (1,); PyTorch default init is
    # U(-1, 1) for fan_in = 1.
    weight = jax.random.uniform(kw, (1, 1), jnp.float32, minval=-1.0, maxval=1.0)
    bias = jax.random.uniform(kb, (1,), jnp.float32, minval=-1.0, maxval=1.0)

    # Small batch of scalar features, matching the module's (N, 1) input convention.
    x = jax.random.normal(kx, (8, 1), jnp.float32)

    out = logistic_regression_forward(x, weight, bias)
    jax.block_until_ready(out)

    # Reference check in plain JAX (tolerance accounts for the EUP approx reciprocal).
    ref = jax.nn.sigmoid(x @ weight.T + bias)
    assert out.shape == (8, 1)
    assert jnp.allclose(out, ref, atol=2e-3, rtol=2e-3)
    print("KERNEL_OK")
</pallas_src>

<mosaic_0001>
module attributes {stable_mosaic.version = 11 : i64} {
  func.func @_logreg_kernel(%arg0: i32, %arg1: memref<1x1xf32, #tpu.memory_space<smem>>, %arg2: memref<1x1xf32, #tpu.memory_space<smem>>, %arg3: memref<8x128xf32, #tpu.memory_space<vmem>>, %arg4: memref<8x128xf32, #tpu.memory_space<vmem>>) attributes {dimension_semantics = [#tpu.dimension_semantics<parallel>], iteration_bounds = array<i64: 1>, scalar_prefetch = 0 : i64, scratch_operands = 0 : i64, tpu.core_type = #tpu.core_type<tc>, window_params = [{transform_indices = @transform_0, window_bounds = array<i64: 1, 1>}, {transform_indices = @transform_1, window_bounds = array<i64: 1, 1>}, {transform_indices = @transform_2, window_bounds = array<i64: 8, 128>}, {transform_indices = @transform_3, window_bounds = array<i64: 8, 128>}]} {
    %c0 = arith.constant 0 : index
    %c0_0 = arith.constant 0 : index
    %0 = memref.load %arg1[%c0, %c0_0] : memref<1x1xf32, #tpu.memory_space<smem>>
    %c0_1 = arith.constant 0 : index
    %c0_2 = arith.constant 0 : index
    %1 = memref.load %arg2[%c0_1, %c0_2] : memref<1x1xf32, #tpu.memory_space<smem>>
    %c0_3 = arith.constant 0 : index
    %c0_4 = arith.constant 0 : index
    %2 = vector.load %arg3[%c0_3, %c0_4] : memref<8x128xf32, #tpu.memory_space<vmem>>, vector<8x128xf32>
    %3 = vector.broadcast %0 : f32 to vector<8x128xf32>
    %4 = arith.mulf %2, %3 : vector<8x128xf32>
    %5 = vector.broadcast %1 : f32 to vector<8x128xf32>
    %6 = arith.addf %4, %5 : vector<8x128xf32>
    %cst = arith.constant 0.000000e+00 : f32
    %7 = vector.broadcast %cst : f32 to vector<8x128xf32>
    %8 = arith.subf %7, %6 : vector<8x128xf32>
    %9 = math.exp %8 : vector<8x128xf32>
    %cst_5 = arith.constant 1.000000e+00 : f32
    %10 = vector.broadcast %cst_5 : f32 to vector<8x128xf32>
    %11 = arith.addf %10, %9 : vector<8x128xf32>
    %12 = tpu.reciprocal %11 {approx = true} : vector<8x128xf32> -> vector<8x128xf32>
    %c0_6 = arith.constant 0 : index
    %c0_7 = arith.constant 0 : index
    %13 = vector.load %arg4[%c0_6, %c0_7] : memref<8x128xf32, #tpu.memory_space<vmem>>, vector<8x128xf32>
    tpu.vector_store %arg4[%c0_6, %c0_7], %12 {strides = array<i32>} : memref<8x128xf32, #tpu.memory_space<vmem>>, vector<8x128xf32>,
    return
  }
  func.func @transform_0(%arg0: i32) -> (i32, i32) {
    %c0_i32 = arith.constant 0 : i32
    %c0_i32_0 = arith.constant 0 : i32
    %c0_i32_1 = arith.constant 0 : i32
    return %c0_i32, %c0_i32_0 : i32, i32
  }
  func.func @transform_1(%arg0: i32) -> (i32, i32) {
    %c0_i32 = arith.constant 0 : i32
    %c0_i32_0 = arith.constant 0 : i32
    %c0_i32_1 = arith.constant 0 : i32
    return %c0_i32, %c0_i32_0 : i32, i32
  }
  func.func @transform_2(%arg0: i32) -> (i32, i32) {
    %c0_i32 = arith.constant 0 : i32
    %c0_i32_0 = arith.constant 0 : i32
    return %arg0, %c0_i32 : i32, i32
  }
  func.func @transform_3(%arg0: i32) -> (i32, i32) {
    %c0_i32 = arith.constant 0 : i32
    %c0_i32_0 = arith.constant 0 : i32
    return %arg0, %c0_i32 : i32, i32
  }
}

</mosaic_0001>

<bundles_post_ra>
// kernel: tpu_custom_call.1
= control target key start
LH: loop header
LB: loop body
LE: loop exit
PB: predicated region body
PF: predicated region fallthrough
CT: control target
= control target key end

     0   :  { %10 = vsyncpa [#allocation5], 0  ;;  %s153_s0 = inlined_call_operand.<no memory space> [shape: f32[1,1], index: 0, kind: input, shape index: {}]   ;;  %s154_s1 = inlined_call_operand.<no memory space> [shape: f32[1,1], index: 1, kind: input, shape index: {}]   ;;  %s155_s2 = inlined_call_operand.hbm [shape: f32[8,128], index: 2, kind: input, shape index: {}]   ;;  %s156_s3 = inlined_call_operand.hbm [shape: f32[8,128], index: 3, kind: output, shape index: {}]  }
   0x1   :  { %11 = vsyncpa [#allocation6], 0  ;;  %s21_s14 = sshll.u32 %s155_s2, 4  ;;  %s119_s15 = smov [#allocation4]   ;;  %s22_s14 = int_to_ptr.hbm [resolvable:$true] %s21_s14 }
   0x2   :  { %s23_s16 = sshll.u32 %s119_s15, 4  ;;  %s24_s16 = int_to_ptr.vmem [resolvable:$true] %s23_s16 }
   0x3   :  { %26 = dma.hbm_to_vmem [thread:$0]  %s22_s14, 128, %s24_s16, [#allocation5]  }
   0x4   :  { %115 = dma.done.wait [#allocation5], 128  }
   0x5   :  { %116 = vsyncadd [#allocation5], 4294967168  ;;  %v34_v0 = vstv %s153_s0  ;;  %v33_v1 = vld [vmem:[#allocation4] sm:$0xff]  ;;  %v36_v2 = vstv %s154_s1  ;;  %s120_s2 = smov [#allocation7]   ;;  %s51_s24 = sshll.u32 %s156_s3, 4  ;;  %s52_s24 = int_to_ptr.hbm [resolvable:$true] %s51_s24 }
   0x6   :  { %v35_v3 = vmul.f32 %v34_v0, %v33_v1  ;;  %s49_s21 = sshll.u32 %s120_s2, 4  ;;  %s50_s21 = int_to_ptr.vmem [resolvable:$true] %s49_s21 }
   0x8   :  { %v37_v4 = vadd.f32 %v36_v2, %v35_v3 }
   0xa   :  { %v38_v5 = vsub.f32 0.0, %v37_v4 }
   0xc   :  { %v39_v6 = vmul.f32 1.442695, %v38_v5 }
   0xe   :  { %63 = vpow2.f32 %v39_v6 }
  0x14   :  { %v64_v7 = vpop.eup %63 }
  0x15   :  { %v41_v8 = vadd.f32 1.0, %v64_v7 }
  0x17   :  { %65 = vrcp.f32 %v41_v8 }
  0x1d   :  { %v66_v9 = vpop.eup %65 }
  0x1e   :  { %43 = vst [vmem:[#allocation7] sm:$0xff] %v66_v9 }
  0x1f   :  { %54 = dma.vmem_to_hbm [thread:$0]  %s50_s21, 128, %s52_s24, [#allocation6]  }
  0x20   :  { %117 = dma.done.wait [#allocation6], 128  }
  0x21   :  { %118 = vsyncadd [#allocation6], 4294967168 }
  0x22   :  { %59 = vsyncpa [#allocation5], 1 }
  0x23   :  { %60 = vsyncpa [#allocation6], 1 }

</bundles_post_ra>
